<compile_context>
chip_gen: v7x
topology: tpu7x:2x2x1
jax: 0.10.0
libtpu: 0.0.40
codegen_flags: <defaults>
</compile_context>

<pallas_src>
import functools
import math

import numpy as np
import jax
import jax.numpy as jnp
from jax.experimental import pallas as pl
from jax.experimental.pallas import tpu as pltpu


def convsig_kernel(x_ref, w_ref, b_ref, o_ref, *, kh_size, kw_size, cin, wp, n_out):
    # x_ref: (Cin, L_pad)       padded input; channels on sublanes, flat (b,y,x) on lanes
    # w_ref: (Cout, KH*KW*Cin)  tap-stacked weights, column order (kh, kw, ci)
    # b_ref: (Cout, 1)          bias (f32)
    # o_ref: (Cout, n_out)      output; n_out is a multiple of 128 (dense stores)
    xv = x_ref[...]                                   # one VMEM load of the whole slab
    wv = w_ref[...]
    cout = o_ref.shape[0]

    acc = jnp.zeros((cout, n_out), jnp.float32)
    for kh in range(kh_size):                         # static, fully unrolled (KH*KW taps)
        for kw in range(kw_size):
            t = kh * kw_size + kw
            off = kh * wp + kw                        # static flat shift for this tap
            rhs = xv[:, off:off + n_out]              # (Cin, n_out): lane-offset slice
            w_tap = wv[:, t * cin:(t + 1) * cin]      # (Cout, Cin)
            acc = acc + jax.lax.dot_general(          # MXU, f32 accumulation
                w_tap, rhs,
                dimension_numbers=(((1,), (0,)), ((), ())),
                preferred_element_type=jnp.float32)

    acc = acc + b_ref[...]                            # (Cout, 1) broadcast, f32
    # sigmoid: exp on EUP + approximate reciprocal on EUP (no VALU divide)
    y = pl.reciprocal(1.0 + jnp.exp(-acc), approx=True)
    o_ref[...] = y.astype(o_ref.dtype)                # dense (Cout, n_out) store


def convsig_pallas(x_nchw, w, bias, kernel_size, stride=1, use_bf16_matmul=True):
    """ConvSig forward: tf-'same' pad + Conv2d(kernel_size, stride) + Sigmoid.

    x_nchw: (B, Cin, H, W); w: (KH, KW, Cin, Cout) (== torch weight.permute(2,3,1,0));
    bias: (Cout,). Returns NCHW (B, Cout, H_out, W_out) in float32.
    """
    if isinstance(kernel_size, (tuple, list)):
        k_y, k_x = kernel_size
    else:
        k_y = k_x = kernel_size
    if isinstance(stride, (tuple, list)):
        s_y, s_x = stride
    else:
        s_y = s_x = stride

    B, Cin, H, W = x_nchw.shape
    Cout = w.shape[-1]

    # tf-"same" padding (identical to PadSameConv2d).
    pad_y = (s_y * (math.ceil(H / s_y) - 1) + k_y - H) / 2
    pad_x = (s_x * (math.ceil(W / s_x) - 1) + k_x - W) / 2
    pt, pb = math.floor(pad_y), math.ceil(pad_y)
    pleft, pright = math.floor(pad_x), math.ceil(pad_x)

    # Keep channels on sublanes (Cin is small); flatten (b, y, x) onto the lane axis.
    x_pad = jnp.pad(x_nchw, ((0, 0), (0, 0), (pt, pb), (pleft, pright)))
    Hp, Wp = x_pad.shape[2], x_pad.shape[3]
    H_out = (Hp - k_y) // s_y + 1
    W_out = (Wp - k_x) // s_x + 1

    L = B * Hp * Wp                         # flat padded length (all batches stacked)
    off_max = (k_y - 1) * Wp + (k_x - 1)    # largest tap shift
    n_valid = L - off_max
    n_out = ((n_valid + 127) // 128) * 128  # lane-dense output width (multiple of 128)
    l_pad = off_max + n_out                 # guarantees every tap slice stays in bounds

    x_flat = jnp.transpose(x_pad, (1, 0, 2, 3)).reshape(Cin, L)
    x_flat = jnp.pad(x_flat, ((0, 0), (0, l_pad - L)))

    # bf16 MXU operands when inputs arrive as f32 (2x MXU rate on v6e/v7x, half the
    # operand DMA/VMEM); accumulation / bias / sigmoid remain f32.
    op_dtype = x_flat.dtype
    if use_bf16_matmul and op_dtype == jnp.float32:
        op_dtype = jnp.bfloat16
    x_flat = x_flat.astype(op_dtype)

    # Restack weights once, wrapper-side: (KH,KW,Cin,Cout) -> (Cout, KH*KW*Cin),
    # column order (kh, kw, ci) to match the kernel's per-tap slicing.
    w_stacked = jnp.transpose(
        jnp.asarray(w).reshape(k_y * k_x * Cin, Cout)).astype(op_dtype)
    bias_col = jnp.asarray(bias).reshape(Cout, 1).astype(jnp.float32)

    kern = functools.partial(
        convsig_kernel, kh_size=k_y, kw_size=k_x, cin=Cin, wp=Wp, n_out=n_out)

    # Whole problem fits one grid step at these sizes (batch folded into the lane dim);
    # TODO(synk): re-introduce a >=2-step "parallel" H-tile axis for production sizes
    # so both v7x TensorCores are used.
    out = pl.pallas_call(
        kern,
        out_shape=jax.ShapeDtypeStruct((Cout, n_out), jnp.float32),
        in_specs=[pl.BlockSpec(memory_space=pltpu.MemorySpace.VMEM)] * 3,
        out_specs=pl.BlockSpec(memory_space=pltpu.MemorySpace.VMEM),
    )(x_flat, w_stacked, bias_col)

    # Un-flatten, keep valid (strided) output positions, back to NCHW — cheap XLA glue.
    if n_out >= L:
        full = out[:, :L]
    else:
        full = jnp.pad(out, ((0, 0), (0, L - n_out)))
    full = full.reshape(Cout, B, Hp, Wp)
    y = full[:, :, 0:s_y * (H_out - 1) + 1:s_y, 0:s_x * (W_out - 1) + 1:s_x]
    return jnp.transpose(y, (1, 0, 2, 3))   # (B, Cout, H_out, W_out)


def ref_convsig_np(x_nchw, w, bias, kernel_size, stride=1):
    """Pure-numpy reference of PadSameConv2d + Conv2d + Sigmoid (NCHW)."""
    if isinstance(kernel_size, (tuple, list)):
        k_y, k_x = kernel_size
    else:
        k_y = k_x = kernel_size
    if isinstance(stride, (tuple, list)):
        s_y, s_x = stride
    else:
        s_y = s_x = stride
    B, Cin, H, W = x_nchw.shape
    Cout = w.shape[-1]
    pad_y = (s_y * (math.ceil(H / s_y) - 1) + k_y - H) / 2
    pad_x = (s_x * (math.ceil(W / s_x) - 1) + k_x - W) / 2
    pt, pb = math.floor(pad_y), math.ceil(pad_y)
    pleft, pright = math.floor(pad_x), math.ceil(pad_x)
    xp = np.pad(x_nchw, ((0, 0), (0, 0), (pt, pb), (pleft, pright)))
    Hp, Wp = xp.shape[2], xp.shape[3]
    Ho = (Hp - k_y) // s_y + 1
    Wo = (Wp - k_x) // s_x + 1
    y = np.zeros((B, Cout, Ho, Wo), np.float64)
    for kh in range(k_y):
        for kw in range(k_x):
            patch = xp[:, :, kh:kh + s_y * (Ho - 1) + 1:s_y,
                          kw:kw + s_x * (Wo - 1) + 1:s_x]
            y += np.einsum('bchw,co->bohw', patch, w[kh, kw])
    y += bias[None, :, None, None]
    return (1.0 / (1.0 + np.exp(-y))).astype(np.float32)


if __name__ == "__main__":
    key = jax.random.PRNGKey(0)
    B, Cin, Cout, H, W = 2, 4, 8, 16, 16
    kernel_size, stride = 3, 1
    k1, k2, k3 = jax.random.split(key, 3)

    x = jax.random.normal(k1, (B, Cin, H, W), jnp.float32)
    # Synthetic parameters stored directly as (KH, KW, Cin, Cout)
    # (== torch Conv2d weight.permute(2, 3, 1, 0)).
    w = jax.random.normal(k2, (kernel_size, kernel_size, Cin, Cout), jnp.float32) * 0.1
    bias = jax.random.normal(k3, (Cout,), jnp.float32) * 0.1

    out = convsig_pallas(x, w, bias, kernel_size, stride)
    out = jax.block_until_ready(out)

    ref = ref_convsig_np(np.asarray(x), np.asarray(w), np.asarray(bias),
                         kernel_size, stride)
    assert out.shape == ref.shape == (B, Cout, H, W), (out.shape, ref.shape)
    # Tolerance accounts for bf16 MXU operands + EUP approximate reciprocal in the
    # sigmoid (outputs bounded in [0,1]; observed errors are ~1e-3 scale).
    np.testing.assert_allclose(np.asarray(out), ref, rtol=2e-2, atol=2e-2)

    print("KERNEL_OK")
</pallas_src>

<mosaic_0001>
module attributes {stable_mosaic.version = 11 : i64} {
  func.func @convsig_kernel(%arg0: memref<4x678xbf16, #tpu.memory_space<vmem>>, %arg1: memref<8x36xbf16, #tpu.memory_space<vmem>>, %arg2: memref<8x1xf32, #tpu.memory_space<vmem>>, %arg3: memref<8x640xf32, #tpu.memory_space<vmem>>) attributes {dimension_semantics = [], scalar_prefetch = 0 : i64, scratch_operands = 0 : i64, tpu.core_type = #tpu.core_type<tc>} {
    %c0 = arith.constant 0 : index
    %c0_0 = arith.constant 0 : index
    %0 = vector.load %arg0[%c0, %c0_0] : memref<4x678xbf16, #tpu.memory_space<vmem>>, vector<4x678xbf16>
    %c0_1 = arith.constant 0 : index
    %c0_2 = arith.constant 0 : index
    %1 = vector.load %arg1[%c0_1, %c0_2] : memref<8x36xbf16, #tpu.memory_space<vmem>>, vector<8x36xbf16>
    %cst = arith.constant 0.000000e+00 : f32
    %2 = vector.broadcast %cst : f32 to vector<8x640xf32>
    %3 = vector.extract_strided_slice %0 {offsets = [0, 0], sizes = [4, 640], strides = [1, 1]} : vector<4x678xbf16> to vector<4x640xbf16>
    %4 = vector.extract_strided_slice %1 {offsets = [0, 0], sizes = [8, 4], strides = [1, 1]} : vector<8x36xbf16> to vector<8x4xbf16>
    %cst_3 = arith.constant dense<0.000000e+00> : vector<8x640xf32>
    %5 = tpu.matmul %4, %3, %cst_3 {dimension_numbers = #tpu.dot_dimension_numbers<[1], [0], [0], [1], [0, 0, 1, 1], [], []>} : vector<8x4xbf16>, vector<4x640xbf16>, vector<8x640xf32> -> vector<8x640xf32>
    %6 = arith.addf %2, %5 : vector<8x640xf32>
    %7 = vector.extract_strided_slice %0 {offsets = [0, 1], sizes = [4, 640], strides = [1, 1]} : vector<4x678xbf16> to vector<4x640xbf16>
    %8 = vector.extract_strided_slice %1 {offsets = [0, 4], sizes = [8, 4], strides = [1, 1]} : vector<8x36xbf16> to vector<8x4xbf16>
    %cst_4 = arith.constant dense<0.000000e+00> : vector<8x640xf32>
    %9 = tpu.matmul %8, %7, %cst_4 {dimension_numbers = #tpu.dot_dimension_numbers<[1], [0], [0], [1], [0, 0, 1, 1], [], []>} : vector<8x4xbf16>, vector<4x640xbf16>, vector<8x640xf32> -> vector<8x640xf32>
    %10 = arith.addf %6, %9 : vector<8x640xf32>
    %11 = vector.extract_strided_slice %0 {offsets = [0, 2], sizes = [4, 640], strides = [1, 1]} : vector<4x678xbf16> to vector<4x640xbf16>
    %12 = vector.extract_strided_slice %1 {offsets = [0, 8], sizes = [8, 4], strides = [1, 1]} : vector<8x36xbf16> to vector<8x4xbf16>
    %cst_5 = arith.constant dense<0.000000e+00> : vector<8x640xf32>
    %13 = tpu.matmul %12, %11, %cst_5 {dimension_numbers = #tpu.dot_dimension_numbers<[1], [0], [0], [1], [0, 0, 1, 1], [], []>} : vector<8x4xbf16>, vector<4x640xbf16>, vector<8x640xf32> -> vector<8x640xf32>
    %14 = arith.addf %10, %13 : vector<8x640xf32>
    %15 = vector.extract_strided_slice %0 {offsets = [0, 18], sizes = [4, 640], strides = [1, 1]} : vector<4x678xbf16> to vector<4x640xbf16>
    %16 = vector.extract_strided_slice %1 {offsets = [0, 12], sizes = [8, 4], strides = [1, 1]} : vector<8x36xbf16> to vector<8x4xbf16>
    %cst_6 = arith.constant dense<0.000000e+00> : vector<8x640xf32>
    %17 = tpu.matmul %16, %15, %cst_6 {dimension_numbers = #tpu.dot_dimension_numbers<[1], [0], [0], [1], [0, 0, 1, 1], [], []>} : vector<8x4xbf16>, vector<4x640xbf16>, vector<8x640xf32> -> vector<8x640xf32>
    %18 = arith.addf %14, %17 : vector<8x640xf32>
    %19 = vector.extract_strided_slice %0 {offsets = [0, 19], sizes = [4, 640], strides = [1, 1]} : vector<4x678xbf16> to vector<4x640xbf16>
    %20 = vector.extract_strided_slice %1 {offsets = [0, 16], sizes = [8, 4], strides = [1, 1]} : vector<8x36xbf16> to vector<8x4xbf16>
    %cst_7 = arith.constant dense<0.000000e+00> : vector<8x640xf32>
    %21 = tpu.matmul %20, %19, %cst_7 {dimension_numbers = #tpu.dot_dimension_numbers<[1], [0], [0], [1], [0, 0, 1, 1], [], []>} : vector<8x4xbf16>, vector<4x640xbf16>, vector<8x640xf32> -> vector<8x640xf32>
    %22 = arith.addf %18, %21 : vector<8x640xf32>
    %23 = vector.extract_strided_slice %0 {offsets = [0, 20], sizes = [4, 640], strides = [1, 1]} : vector<4x678xbf16> to vector<4x640xbf16>
    %24 = vector.extract_strided_slice %1 {offsets = [0, 20], sizes = [8, 4], strides = [1, 1]} : vector<8x36xbf16> to vector<8x4xbf16>
    %cst_8 = arith.constant dense<0.000000e+00> : vector<8x640xf32>
    %25 = tpu.matmul %24, %23, %cst_8 {dimension_numbers = #tpu.dot_dimension_numbers<[1], [0], [0], [1], [0, 0, 1, 1], [], []>} : vector<8x4xbf16>, vector<4x640xbf16>, vector<8x640xf32> -> vector<8x640xf32>
    %26 = arith.addf %22, %25 : vector<8x640xf32>
    %27 = vector.extract_strided_slice %0 {offsets = [0, 36], sizes = [4, 640], strides = [1, 1]} : vector<4x678xbf16> to vector<4x640xbf16>
    %28 = vector.extract_strided_slice %1 {offsets = [0, 24], sizes = [8, 4], strides = [1, 1]} : vector<8x36xbf16> to vector<8x4xbf16>
    %cst_9 = arith.constant dense<0.000000e+00> : vector<8x640xf32>
    %29 = tpu.matmul %28, %27, %cst_9 {dimension_numbers = #tpu.dot_dimension_numbers<[1], [0], [0], [1], [0, 0, 1, 1], [], []>} : vector<8x4xbf16>, vector<4x640xbf16>, vector<8x640xf32> -> vector<8x640xf32>
    %30 = arith.addf %26, %29 : vector<8x640xf32>
    %31 = vector.extract_strided_slice %0 {offsets = [0, 37], sizes = [4, 640], strides = [1, 1]} : vector<4x678xbf16> to vector<4x640xbf16>
    %32 = vector.extract_strided_slice %1 {offsets = [0, 28], sizes = [8, 4], strides = [1, 1]} : vector<8x36xbf16> to vector<8x4xbf16>
    %cst_10 = arith.constant dense<0.000000e+00> : vector<8x640xf32>
    %33 = tpu.matmul %32, %31, %cst_10 {dimension_numbers = #tpu.dot_dimension_numbers<[1], [0], [0], [1], [0, 0, 1, 1], [], []>} : vector<8x4xbf16>, vector<4x640xbf16>, vector<8x640xf32> -> vector<8x640xf32>
    %34 = arith.addf %30, %33 : vector<8x640xf32>
    %35 = vector.extract_strided_slice %0 {offsets = [0, 38], sizes = [4, 640], strides = [1, 1]} : vector<4x678xbf16> to vector<4x640xbf16>
    %36 = vector.extract_strided_slice %1 {offsets = [0, 32], sizes = [8, 4], strides = [1, 1]} : vector<8x36xbf16> to vector<8x4xbf16>
    %cst_11 = arith.constant dense<0.000000e+00> : vector<8x640xf32>
    %37 = tpu.matmul %36, %35, %cst_11 {dimension_numbers = #tpu.dot_dimension_numbers<[1], [0], [0], [1], [0, 0, 1, 1], [], []>} : vector<8x4xbf16>, vector<4x640xbf16>, vector<8x640xf32> -> vector<8x640xf32>
    %38 = arith.addf %34, %37 : vector<8x640xf32>
    %c0_12 = arith.constant 0 : index
    %c0_13 = arith.constant 0 : index
    %39 = vector.load %arg2[%c0_12, %c0_13] : memref<8x1xf32, #tpu.memory_space<vmem>>, vector<8x1xf32>
    %40 = vector.broadcast %39 : vector<8x1xf32> to vector<8x640xf32>
    %41 = arith.addf %38, %40 : vector<8x640xf32>
    %cst_14 = arith.constant 0.000000e+00 : f32
    %42 = vector.broadcast %cst_14 : f32 to vector<8x640xf32>
    %43 = arith.subf %42, %41 : vector<8x640xf32>
    %44 = math.exp %43 : vector<8x640xf32>
    %cst_15 = arith.constant 1.000000e+00 : f32
    %45 = vector.broadcast %cst_15 : f32 to vector<8x640xf32>
    %46 = arith.addf %45, %44 : vector<8x640xf32>
    %47 = tpu.reciprocal %46 {approx = true} : vector<8x640xf32> -> vector<8x640xf32>
    %c0_16 = arith.constant 0 : index
    %c0_17 = arith.constant 0 : index
    %48 = vector.load %arg3[%c0_16, %c0_17] : memref<8x640xf32, #tpu.memory_space<vmem>>, vector<8x640xf32>
    tpu.vector_store %arg3[%c0_16, %c0_17], %47 {strides = array<i32>} : memref<8x640xf32, #tpu.memory_space<vmem>>, vector<8x640xf32>,
    return
  }
}

</mosaic_0001>

<bundles_post_ra>
// kernel: tpu_custom_call.1
= control target key start
LH: loop header
LB: loop body
LE: loop exit
PB: predicated region body
PF: predicated region fallthrough
CT: control target
= control target key end

     0   :  { %8 = vsyncpa [#allocation3], 0  ;;  %s2102_s0 = inlined_call_operand.hbm [shape: bf16[4,678], index: 0, kind: input, shape index: {}]   ;;  %s2103_s1 = inlined_call_operand.vmem [shape: bf16[8,36], index: 1, kind: input, shape index: {}]   ;;  %s2104_s2 = inlined_call_operand.vmem [shape: f32[8,1], index: 2, kind: input, shape index: {}]   ;;  %s2105_s3 = inlined_call_operand.hbm [shape: f32[8,640], index: 3, kind: output, shape index: {}]  }
   0x1   :  { %9 = vsyncpa [#allocation4], 0  ;;  %s1785_s12 = smov [#allocation2]   ;;  %s1737_s16 = scalar_lea.hbm %s2102_s0, 192 }
   0x2   :  { %s16_s13 = sshll.u32 %s1785_s12, 4  ;;  %p1738_p0 = scmp.ne.s32.totalorder %s2102_s0, %s1737_s16  ;;  %s17_s13 = int_to_ptr.vmem [resolvable:$true] %s16_s13 }
   0x3   :  { %p1741_p1 = scmp.lt.u32.totalorder %s1737_s16, %s2102_s0 }
   0x5   :  { %p1743_p2 = pnand %p1741_p1, %p1738_p0 }
   0x7   :  { %1746 = shalt.err (!%p1743_p2)
}
   0x8   :  { %s1747_s21 = scalar_lea.vmem %s17_s13, 192  ;;  %p1752_p4 = scmp.lt.s32.totalorder %s17_s13, %s17_s13 }
   0x9   :  { %p1748_p3 = scmp.ne.s32.totalorder %s17_s13, %s1747_s21  ;;  %p1753_p5 = scmp.lt.s32.totalorder %s1747_s21, %s1747_s21 }
   0xb   :  { %p1754_p6 = por %p1753_p5, %p1752_p4 }
   0xd   :  { %p1755_p7 = pnand %p1754_p6, %p1748_p3 }
   0xf   :  { %1758 = shalt.err (!%p1755_p7)
}
  0x10   :  { %19 = dma.hbm_to_vmem [thread:$0]  %s2102_s0, 192, %s17_s13, [#allocation3]  }
  0x11   :  { %1781 = dma.done.wait [#allocation3], 192  }
  0x12   :  { %1782 = vsyncadd [#allocation3], 4294967104  ;;  %v42_v0 = vlaneseq  ;;  %v1786_v1 = vmov 1983009808   ;;  %v1787_v6 = vmov 0   ;;  %v28_v8 = vld [vmem:[#allocation2] sm:$0xff] }
  0x13   :  { %v40_v2 = vunpack.c.l.s4 %v1786_v1  ;;  %133 = vmatprep.mubr.bf16.mxu0 %v1787_v6  ;;  %174 = vmatprep.mubr.bf16.mxu1 %v1787_v6  ;;  %v1844_v7 = vld [vmem:[%s2103_s1] sm:$0xf]  ;;  %v38_v11 = vcombine.high %v28_v8, %v28_v8  ;;  %s1788_s0 = smov 124   ;;  %s1789_s26 = smov 127   ;;  %vm75_vm0 = vcmask 1039360   ;;  %vm85_vm1 = vcmask 1041408  }
  0x14   :  { %v43_v3 = vshrl.u32 %v42_v0, 7  ;;  %1714 = vset.pattern.permute.xlu0 %v1787_v6  ;;  %v1848_v9 = vcombine.low %v1844_v7, %v1844_v7  ;;  %v1860_v14 = vld.sshfl [vmem:[#allocation2 + $0x8] sm:$0x33 pattern:$0x76325410]  ;;  %s1790_s1 = smov 126  }
  0x15   :  { %v41_v4 = vunpack.c.0.s8 %v40_v2  ;;  %v1866_v15 = vcombine.high %v1860_v14, %v1860_v14  ;;  %s1791_s27 = smov 120   ;;  %s1792_s28 = smov 110   ;;  %v1518_v17 = vld [vmem:[%s2104_s2] sm:$0xff]  ;;  %vm81_vm2 = vcmask 31744   ;;  %v1803_v27 = vmov 0.0  }
  0x16   :  { %34 = vrot.lane.b32.xlu1 %v1848_v9, %s1788_s0  ;;  %s1793_s29 = smov 116   ;;  %s1794_s30 = smov 109   ;;  %vm1804_vm3 = vmmov 0   ;;  %vm377_vm4 = vcmask 1031168   ;;  %v239_v45 = vsel %vm85_vm1, %v1860_v14, 0  ;;  %vm542_vm5 = vcmask 900096  }
  0x17   :  { %v44_v5 = vsub.s32 %v41_v4, %v43_v3  ;;  %s1795_s4 = smov 112   ;;  %s1796_s5 = smov 108   ;;  %vm707_vm6 = vcmask 891904   ;;  %vm872_vm7 = vcmask 883712   ;;  %vm1037_vm8 = vcmask 752640  }
  0x18   :  { %s1797_s6 = smov 92   ;;  %s1798_s7 = smov 104   ;;  %vm1202_vm9 = vcmask 744448   ;;  %vm1367_vm10 = vcmask 736256  }
  0x19   :  { %v1850_v10 = vrot.slane %v28_v8, %v44_v5  ;;  %v1858_v13 = vrot.slane %v38_v11, %v44_v5  ;;  %s1799_s8 = smov 91   ;;  %s1800_s9 = smov 100  }
  0x1a   :  { %s1801_s10 = smov 90   ;;  %s1802_s11 = smov 96  }
  0x1b   :  { %63 = vrot.lane.b32.xlu0 %v1850_v10, %s1789_s26  ;;  %v1856_v12 = vcombine.high %v1850_v10, %v1850_v10  ;;  %67 = vrot.lane.b32.xlu1 %v1858_v13, %s1789_s26  ;;  %v1872_v16 = vcombine.high %v1858_v13, %v1858_v13  ;;  %v233_v37 = vsel %vm85_vm1, %v1858_v13, 0  ;;  %v227_v38 = vsel %vm85_vm1, %v1850_v10, 0  ;;  %s1805_s2 = smov [#allocation5]  }
  0x1c   :  { %s1565_s14 = sshll.u32 %s1805_s2, 4  ;;  %s1566_s14 = int_to_ptr.vmem [resolvable:$true] %s1565_s14 }
  0x1d   :  { %s1759_s15 = scalar_lea.vmem %s1566_s14, 640  ;;  %p1764_p9 = scmp.lt.s32.totalorder %s1566_s14, %s1566_s14 }
  0x1e   :  { %p1760_p8 = scmp.ne.s32.totalorder %s1566_s14, %s1759_s15  ;;  %p1765_p10 = scmp.lt.s32.totalorder %s1759_s15, %s1759_s15 }
  0x1f   :  { %65 = vrot.lane.b32.xlu0 %v1856_v12, %s1789_s26  ;;  %71 = vrot.lane.b32.xlu1 %v1860_v14, %s1789_s26 }
  0x20   :  { %p1766_p11 = por %p1765_p10, %p1764_p9 }
  0x22   :  { %p1767_p12 = pnand %p1766_p11, %p1760_p8 }
  0x23   :  { %73 = vrot.lane.b32.xlu0 %v1866_v15, %s1789_s26  ;;  %365 = vrot.lane.b32.xlu1 %v1850_v10, %s1790_s1 }
  0x27   :  { %69 = vrot.lane.b32.xlu0 %v1872_v16, %s1789_s26  ;;  %369 = vrot.lane.b32.xlu1 %v1858_v13, %s1790_s1 }
  0x2b   :  { %367 = vrot.lane.b32.xlu0 %v1856_v12, %s1790_s1  ;;  %371 = vrot.lane.b32.xlu1 %v1872_v16, %s1790_s1 }
  0x2f   :  { %363 = vrot.lane.b32.xlu0 %v1848_v9, %s1791_s27  ;;  %375 = vrot.lane.b32.xlu1 %v1866_v15, %s1790_s1 }
  0x33   :  { %373 = vrot.lane.b32.xlu0 %v1860_v14, %s1790_s1  ;;  %532 = vrot.lane.b32.xlu1 %v1856_v12, %s1792_s28 }
  0x37   :  { %530 = vrot.lane.b32.xlu0 %v1850_v10, %s1792_s28  ;;  %536 = vrot.lane.b32.xlu1 %v1872_v16, %s1792_s28 }
  0x3b   :  { %534 = vrot.lane.b32.xlu0 %v1858_v13, %s1792_s28  ;;  %528 = vrot.lane.b32.xlu1 %v1848_v9, %s1793_s29 }
  0x3f   :  { %538 = vrot.lane.b32.xlu0 %v1860_v14, %s1792_s28  ;;  %695 = vrot.lane.b32.xlu1 %v1850_v10, %s1794_s30 }
  0x43   :  { %540 = vrot.lane.b32.xlu0 %v1866_v15, %s1792_s28  ;;  %699 = vrot.lane.b32.xlu1 %v1858_v13, %s1794_s30 }
  0x47   :  { %697 = vrot.lane.b32.xlu0 %v1856_v12, %s1794_s30  ;;  %701 = vrot.lane.b32.xlu1 %v1872_v16, %s1794_s30 }
  0x4b   :  { %693 = vrot.lane.b32.xlu0 %v1848_v9, %s1795_s4  ;;  %705 = vrot.lane.b32.xlu1 %v1866_v15, %s1794_s30 }
  0x4f   :  { %703 = vrot.lane.b32.xlu0 %v1860_v14, %s1794_s30  ;;  %862 = vrot.lane.b32.xlu1 %v1856_v12, %s1796_s5 }
  0x53   :  { %860 = vrot.lane.b32.xlu0 %v1850_v10, %s1796_s5  ;;  %866 = vrot.lane.b32.xlu1 %v1872_v16, %s1796_s5 }
  0x57   :  { %864 = vrot.lane.b32.xlu0 %v1858_v13, %s1796_s5  ;;  %858 = vrot.lane.b32.xlu1 %v1848_v9, %s1796_s5 }
  0x5b   :  { %868 = vrot.lane.b32.xlu0 %v1860_v14, %s1796_s5  ;;  %1025 = vrot.lane.b32.xlu1 %v1850_v10, %s1797_s6 }
  0x5f   :  { %870 = vrot.lane.b32.xlu0 %v1866_v15, %s1796_s5  ;;  %1029 = vrot.lane.b32.xlu1 %v1858_v13, %s1797_s6 }
  0x63   :  { %1027 = vrot.lane.b32.xlu0 %v1856_v12, %s1797_s6  ;;  %1031 = vrot.lane.b32.xlu1 %v1872_v16, %s1797_s6 }
  0x67   :  { %1023 = vrot.lane.b32.xlu0 %v1848_v9, %s1798_s7  ;;  %1035 = vrot.lane.b32.xlu1 %v1866_v15, %s1797_s6 }
  0x6b   :  { %1033 = vrot.lane.b32.xlu0 %v1860_v14, %s1797_s6  ;;  %1192 = vrot.lane.b32.xlu1 %v1856_v12, %s1799_s8 }
  0x6f   :  { %1190 = vrot.lane.b32.xlu0 %v1850_v10, %s1799_s8  ;;  %1196 = vrot.lane.b32.xlu1 %v1872_v16, %s1799_s8 }
  0x73   :  { %1194 = vrot.lane.b32.xlu0 %v1858_v13, %s1799_s8  ;;  %1188 = vrot.lane.b32.xlu1 %v1848_v9, %s1800_s9 }
  0x77   :  { %1198 = vrot.lane.b32.xlu0 %v1860_v14, %s1799_s8  ;;  %1355 = vrot.lane.b32.xlu1 %v1850_v10, %s1801_s10 }
  0x7b   :  { %1200 = vrot.lane.b32.xlu0 %v1866_v15, %s1799_s8  ;;  %1359 = vrot.lane.b32.xlu1 %v1858_v13, %s1801_s10 }
  0x7f   :  { %1357 = vrot.lane.b32.xlu0 %v1856_v12, %s1801_s10  ;;  %1361 = vrot.lane.b32.xlu1 %v1872_v16, %s1801_s10 }
  0x83   :  { %1353 = vrot.lane.b32.xlu0 %v1848_v9, %s1802_s11  ;;  %1365 = vrot.lane.b32.xlu1 %v1866_v15, %s1801_s10 }
  0x87   :  { %1363 = vrot.lane.b32.xlu0 %v1860_v14, %s1801_s10 }
  0x88   :  { %v35_v18 = vpop.permute.xlu1 %34 }
  0x8b   :  { %1521 = vperm.xlu0 %1714, %v1518_v17  }
  0x8d   :  { %v64_v19 = vpop.permute.xlu0 %63  ;;  %v68_v21 = vpop.permute.xlu1 %67 }
  0x91   :  { %v66_v20 = vpop.permute.xlu0 %65  ;;  %v72_v26 = vpop.permute.xlu1 %71 }
  0x92   :  { %v77_v22 = vsel %vm75_vm0, %v66_v20, %v68_v21  ;;  %v76_v23 = vsel %vm75_vm0, %v64_v19, %v66_v20 }
  0x93   :  { %1576 = vmatprep.subr.msk.bf16.mxu0 %vm85_vm1, %v77_v22  ;;  %v87_v24 = vsel %vm85_vm1, %v76_v23, 0 }
  0x94   :  { %102 = vmatpush1.bf16.msra.mxu0 %v87_v24 }
  0x95   :  { %v74_v25 = vpop.permute.xlu0 %73  ;;  %1639 = vmatprep.subr.bf16.mxu0 %v1803_v27  ;;  %v366_v30 = vpop.permute.xlu1 %365 }
  0x96   :  { %v80_v28 = vsel %vm75_vm0, %v72_v26, %v74_v25 }
  0x97   :  { %v99_v29 = vsel %vm85_vm1, %v80_v28, 0  ;;  %1577 = vmatmul.mubr.msk.bf16.vlgmr.msra.gmra.mrb[0].mxu0 %vm81_vm2, %v35_v18 }
  0x98   :  { %1640 = vmatpush3.bf16.msra.mxu0 %v99_v29  ;;  %1641 = vmatprep.mubr.msk.bf16.mxu0 %vm1804_vm3, %v1803_v27 }
  0x99   :  { %v70_v31 = vpop.permute.xlu0 %69  ;;  %1583 = vmatprep.subr.msk.bf16.mxu0 %vm85_vm1, %v1872_v16  ;;  %v370_v35 = vpop.permute.xlu1 %369 }
  0x9a   :  { %v79_v32 = vsel %vm75_vm0, %v70_v31, %v72_v26  ;;  %v78_v33 = vsel %vm75_vm0, %v68_v21, %v70_v31 }
  0x9b   :  { %1578 = vmatprep.subr.msk.bf16.mxu1 %vm85_vm1, %v79_v32  ;;  %v93_v34 = vsel %vm85_vm1, %v78_v33, 0 }
  0x9c   :  { %143 = vmatpush1.bf16.msra.mxu1 %v93_v34 }
  0x9d   :  { %v368_v36 = vpop.permute.xlu0 %367  ;;  %1581 = vmatprep.subr.msk.bf16.mxu1 %vm85_vm1, %v1856_v12  ;;  %v372_v40 = vpop.permute.xlu1 %371 }
  0x9e   :  { %v379_v39 = vsel %vm377_vm4, %v368_v36, %v370_v35  ;;  %v378_v42 = vsel %vm377_vm4, %v366_v30, %v368_v36  ;;  %v380_v50 = vsel %vm377_vm4, %v370_v35, %v372_v40 }
  0x9f   :  { %1579 = vmatmul.mubr.msk.bf16.vlgmr.msra.gmra.mrb[0].mxu1 %vm81_vm2, %v35_v18  ;;  %1642 = vmatmul.mubr.msk.bf16.vlgmr.msra.gmra.mrb[4].mxu0 %vm81_vm2, %v35_v18  ;;  %v387_v47 = vsel %vm85_vm1, %v378_v42, 0  ;;  %v393_v55 = vsel %vm85_vm1, %v380_v50, 0 }
  0xa0   :  { %283 = vmatpush1.bf16.msra.mxu0 %v233_v37  ;;  %242 = vmatpush1.bf16.msra.mxu1 %v227_v38 }
  0xa1   :  { %1586 = vmatprep.subr.msk.bf16.mxu0 %vm85_vm1, %v379_v39  ;;  %v364_v41 = vpop.permute.xlu0 %363  ;;  %273 = vmatprep.mubr.bf16.mxu1 %v1787_v6  ;;  %v376_v43 = vpop.permute.xlu1 %375 }
  0xa2   :  { %314 = vmatprep.mubr.bf16.mxu0 %v1787_v6  ;;  %1645 = vmatprep.subr.bf16.mxu1 %v1803_v27 }
  0xa5   :  { %v374_v44 = vpop.permute.xlu0 %373  ;;  %v533_v48 = vpop.permute.xlu1 %532 }
  0xa6   :  { %v381_v46 = vsel %vm377_vm4, %v372_v40, %v374_v44  ;;  %v382_v51 = vsel %vm377_vm4, %v374_v44, %v376_v43 }
  0xa7   :  { %1582 = vmatmul.mubr.msk.bf16.vlgmr.msra.gmra.mrb[4].mxu1 %vm81_vm2, %v1844_v7  ;;  %1584 = vmatmul.mubr.msk.bf16.vlgmr.msra.gmra.mrb[8].mxu0 %vm81_vm2, %v1844_v7  ;;  %v399_v56 = vsel %vm85_vm1, %v382_v51, 0 }
  0xa8   :  { %1646 = vmatpush3.bf16.msra.mxu1 %v239_v45  ;;  %402 = vmatpush1.bf16.msra.mxu0 %v387_v47 }
  0xa9   :  { %1588 = vmatprep.subr.msk.bf16.mxu1 %vm85_vm1, %v381_v46  ;;  %v531_v49 = vpop.permute.xlu0 %530  ;;  %1647 = vmatprep.mubr.msk.bf16.mxu1 %vm1804_vm3, %v1803_v27  ;;  %v537_v52 = vpop.permute.xlu1 %536 }
  0xaa   :  { %433 = vmatprep.mubr.bf16.mxu0 %v1787_v6  ;;  %1651 = vmatprep.subr.bf16.mxu0 %v1803_v27  ;;  %v543_v60 = vsel %vm542_vm5, %v531_v49, %v533_v48 }
  0xab   :  { %v552_v0 = vsel %vm85_vm1, %v543_v60, 0 }
  0xad   :  { %v535_v53 = vpop.permute.xlu0 %534  ;;  %v529_v57 = vpop.permute.xlu1 %528 }
  0xae   :  { %v544_v54 = vsel %vm542_vm5, %v533_v48, %v535_v53  ;;  %v545_v61 = vsel %vm542_vm5, %v535_v53, %v537_v52 }
  0xaf   :  { %1648 = vmatmul.mubr.msk.bf16.vlgmr.msra.gmra.mrb[8].mxu1 %vm81_vm2, %v1844_v7  ;;  %1587 = vmatmul.mubr.msk.bf16.vlgmr.msra.gmra.mrb[12].mxu0 %vm81_vm2, %v364_v41  ;;  %v558_v1 = vsel %vm85_vm1, %v545_v61, 0 }
  0xb0   :  { %443 = vmatpush1.bf16.msra.mxu1 %v393_v55  ;;  %1652 = vmatpush3.bf16.msra.mxu0 %v399_v56 }
  0xb1   :  { %1591 = vmatprep.subr.msk.bf16.mxu1 %vm85_vm1, %v544_v54  ;;  %v539_v58 = vpop.permute.xlu0 %538  ;;  %474 = vmatprep.mubr.bf16.mxu1 %v1787_v6  ;;  %v696_v62 = vpop.permute.xlu1 %695 }
  0xb2   :  { %v546_v59 = vsel %vm542_vm5, %v537_v52, %v539_v58  ;;  %1653 = vmatprep.mubr.msk.bf16.mxu0 %vm1804_vm3, %v1803_v27 }
  0xb3   :  { %1593 = vmatprep.subr.msk.bf16.mxu0 %vm85_vm1, %v546_v59 }
  0xb5   :  { %v541_v63 = vpop.permute.xlu0 %540  ;;  %v700_v2 = vpop.permute.xlu1 %699 }
  0xb6   :  { %v547_v5 = vsel %vm542_vm5, %v539_v58, %v541_v63 }
  0xb7   :  { %1589 = vmatmul.mubr.msk.bf16.vlgmr.msra.gmra.mrb[12].mxu1 %vm81_vm2, %v364_v41  ;;  %1654 = vmatmul.mubr.msk.bf16.vlgmr.msra.gmra.mrb[16].mxu0 %vm81_vm2, %v364_v41  ;;  %v564_v10 = vsel %vm85_vm1, %v547_v5, 0 }
  0xb8   :  { %567 = vmatpush1.bf16.msra.mxu1 %v552_v0  ;;  %608 = vmatpush1.bf16.msra.mxu0 %v558_v1 }
  0xb9   :  { %v698_v3 = vpop.permute.xlu0 %697  ;;  %598 = vmatprep.mubr.bf16.mxu1 %v1787_v6  ;;  %639 = vmatprep.mubr.bf16.mxu0 %v1787_v6  ;;  %v702_v8 = vpop.permute.xlu1 %701 }
  0xba   :  { %v709_v4 = vsel %vm707_vm6, %v698_v3, %v700_v2  ;;  %1657 = vmatprep.subr.bf16.mxu1 %v1803_v27  ;;  %v708_v7 = vsel %vm707_vm6, %v696_v62, %v698_v3  ;;  %v710_v15 = vsel %vm707_vm6, %v700_v2, %v702_v8 }
  0xbb   :  { %1596 = vmatprep.subr.msk.bf16.mxu0 %vm85_vm1, %v709_v4  ;;  %v717_v11 = vsel %vm85_vm1, %v708_v7, 0  ;;  %v723_v19 = vsel %vm85_vm1, %v710_v15, 0 }
  0xbd   :  { %v694_v9 = vpop.permute.xlu0 %693  ;;  %v706_v12 = vpop.permute.xlu1 %705 }
  0xbf   :  { %1592 = vmatmul.mubr.msk.bf16.vlgmr.msra.gmra.mrb[16].mxu1 %vm81_vm2, %v529_v57  ;;  %1594 = vmatmul.mubr.msk.bf16.vlgmr.msra.gmra.mrb[20].mxu0 %vm81_vm2, %v529_v57 }
  0xc0   :  { %1658 = vmatpush3.bf16.msra.mxu1 %v564_v10  ;;  %732 = vmatpush1.bf16.msra.mxu0 %v717_v11 }
  0xc1   :  { %v704_v13 = vpop.permute.xlu0 %703  ;;  %1659 = vmatprep.mubr.msk.bf16.mxu1 %vm1804_vm3, %v1803_v27  ;;  %763 = vmatprep.mubr.bf16.mxu0 %v1787_v6  ;;  %v863_v17 = vpop.permute.xlu1 %862 }
  0xc2   :  { %v711_v14 = vsel %vm707_vm6, %v702_v8, %v704_v13  ;;  %1663 = vmatprep.subr.bf16.mxu0 %v1803_v27  ;;  %v712_v16 = vsel %vm707_vm6, %v704_v13, %v706_v12 }
  0xc3   :  { %1598 = vmatprep.subr.msk.bf16.mxu1 %vm85_vm1, %v711_v14  ;;  %v729_v20 = vsel %vm85_vm1, %v712_v16, 0 }
  0xc5   :  { %v861_v18 = vpop.permute.xlu0 %860  ;;  %v867_v21 = vpop.permute.xlu1 %866 }
  0xc6   :  { %v873_v24 = vsel %vm872_vm7, %v861_v18, %v863_v17 }
  0xc7   :  { %1660 = vmatmul.mubr.msk.bf16.vlgmr.msra.gmra.mrb[20].mxu1 %vm81_vm2, %v529_v57  ;;  %1597 = vmatmul.mubr.msk.bf16.vlgmr.msra.gmra.mrb[24].mxu0 %vm81_vm2, %v694_v9  ;;  %v882_v30 = vsel %vm85_vm1, %v873_v24, 0 }
  0xc8   :  { %773 = vmatpush1.bf16.msra.mxu1 %v723_v19  ;;  %1664 = vmatpush3.bf16.msra.mxu0 %v729_v20 }
  0xc9   :  { %v865_v22 = vpop.permute.xlu0 %864  ;;  %804 = vmatprep.mubr.bf16.mxu1 %v1787_v6  ;;  %1665 = vmatprep.mubr.msk.bf16.mxu0 %vm1804_vm3, %v1803_v27  ;;  %v859_v26 = vpop.permute.xlu1 %858 }
  0xca   :  { %v874_v23 = vsel %vm872_vm7, %v863_v17, %v865_v22  ;;  %v875_v25 = vsel %vm872_vm7, %v865_v22, %v867_v21 }
  0xcb   :  { %1601 = vmatprep.subr.msk.bf16.mxu1 %vm85_vm1, %v874_v23  ;;  %v888_v31 = vsel %vm85_vm1, %v875_v25, 0 }
  0xcd   :  { %v869_v28 = vpop.permute.xlu0 %868  ;;  %v1026_v32 = vpop.permute.xlu1 %1025 }
  0xce   :  { %v876_v29 = vsel %vm872_vm7, %v867_v21, %v869_v28 }
  0xcf   :  { %1599 = vmatmul.mubr.msk.bf16.vlgmr.msra.gmra.mrb[24].mxu1 %vm81_vm2, %v694_v9  ;;  %1666 = vmatmul.mubr.msk.bf16.vlgmr.msra.gmra.mrb[28].mxu0 %vm81_vm2, %v694_v9 }
  0xd0   :  { %897 = vmatpush1.bf16.msra.mxu1 %v882_v30  ;;  %1603 = vmatprep.subr.msk.bf16.mxu0 %vm85_vm1, %v876_v29 }
  0xd1   :  { %938 = vmatpush1.bf16.msra.mxu0 %v888_v31  ;;  %v871_v33 = vpop.permute.xlu0 %870  ;;  %928 = vmatprep.mubr.bf16.mxu1 %v1787_v6  ;;  %v1030_v35 = vpop.permute.xlu1 %1029 }
  0xd2   :  { %969 = vmatprep.mubr.bf16.mxu0 %v1787_v6  ;;  %1669 = vmatprep.subr.bf16.mxu1 %v1803_v27  ;;  %v877_v34 = vsel %vm872_vm7, %v869_v28, %v871_v33 }
  0xd3   :  { %v894_v39 = vsel %vm85_vm1, %v877_v34, 0 }
  0xd5   :  { %v1028_v36 = vpop.permute.xlu0 %1027  ;;  %v1032_v41 = vpop.permute.xlu1 %1031 }
  0xd6   :  { %v1038_v37 = vsel %vm1037_vm8, %v1026_v32, %v1028_v36  ;;  %v1039_v38 = vsel %vm1037_vm8, %v1028_v36, %v1030_v35  ;;  %v1040_v43 = vsel %vm1037_vm8, %v1030_v35, %v1032_v41 }
  0xd7   :  { %v1047_v40 = vsel %vm85_vm1, %v1038_v37, 0  ;;  %1602 = vmatmul.mubr.msk.bf16.vlgmr.msra.gmra.mrb[28].mxu1 %vm81_vm2, %v859_v26  ;;  %1604 = vmatmul.mubr.msk.bf16.vlgmr.msra.gmra.mrb[32].mxu0 %vm81_vm2, %v859_v26  ;;  %v1053_v49 = vsel %vm85_vm1, %v1040_v43, 0 }
  0xd8   :  { %1670 = vmatpush3.bf16.msra.mxu1 %v894_v39  ;;  %1606 = vmatprep.subr.msk.bf16.mxu0 %vm85_vm1, %v1039_v38 }
  0xd9   :  { %1062 = vmatpush1.bf16.msra.mxu0 %v1047_v40  ;;  %v1024_v42 = vpop.permute.xlu0 %1023  ;;  %1671 = vmatprep.mubr.msk.bf16.mxu1 %vm1804_vm3, %v1803_v27  ;;  %v1036_v44 = vpop.permute.xlu1 %1035 }
  0xda   :  { %1093 = vmatprep.mubr.bf16.mxu0 %v1787_v6  ;;  %1675 = vmatprep.subr.bf16.mxu0 %v1803_v27 }
  0xdd   :  { %v1034_v45 = vpop.permute.xlu0 %1033  ;;  %v1193_v50 = vpop.permute.xlu1 %1192 }
  0xde   :  { %v1041_v46 = vsel %vm1037_vm8, %v1032_v41, %v1034_v45  ;;  %v1042_v47 = vsel %vm1037_vm8, %v1034_v45, %v1036_v44 }
  0xdf   :  { %v1059_v48 = vsel %vm85_vm1, %v1042_v47, 0  ;;  %1672 = vmatmul.mubr.msk.bf16.vlgmr.msra.gmra.mrb[32].mxu1 %vm81_vm2, %v859_v26  ;;  %1607 = vmatmul.mubr.msk.bf16.vlgmr.msra.gmra.mrb[36].mxu0 %vm81_vm2, %v1024_v42 }
  0xe0   :  { %1608 = vmatprep.subr.msk.bf16.mxu1 %vm85_vm1, %v1041_v46  ;;  %1676 = vmatpush3.bf16.msra.mxu0 %v1059_v48 }
  0xe1   :  { %1103 = vmatpush1.bf16.msra.mxu1 %v1053_v49  ;;  %v1191_v51 = vpop.permute.xlu0 %1190  ;;  %1134 = vmatprep.mubr.bf16.mxu1 %v1787_v6  ;;  %v1197_v53 = vpop.permute.xlu1 %1196 }
  0xe2   :  { %1677 = vmatprep.mubr.msk.bf16.mxu0 %vm1804_vm3, %v1803_v27  ;;  %v1203_v52 = vsel %vm1202_vm9, %v1191_v51, %v1193_v50 }
  0xe3   :  { %v1212_v56 = vsel %vm85_vm1, %v1203_v52, 0 }
  0xe5   :  { %v1195_v54 = vpop.permute.xlu0 %1194  ;;  %v1189_v58 = vpop.permute.xlu1 %1188 }
  0xe6   :  { %v1204_v55 = vsel %vm1202_vm9, %v1193_v50, %v1195_v54  ;;  %v1205_v57 = vsel %vm1202_vm9, %v1195_v54, %v1197_v53 }
  0xe7   :  { %1609 = vmatmul.mubr.msk.bf16.vlgmr.msra.gmra.mrb[36].mxu1 %vm81_vm2, %v1024_v42  ;;  %1678 = vmatmul.mubr.msk.bf16.vlgmr.msra.gmra.mrb[40].mxu0 %vm81_vm2, %v1024_v42  ;;  %v1218_v61 = vsel %vm85_vm1, %v1205_v57, 0 }
  0xe8   :  { %1611 = vmatprep.subr.msk.bf16.mxu1 %vm85_vm1, %v1204_v55  ;;  %1258 = vmatprep.mubr.bf16.mxu1 %v1787_v6 }
  0xe9   :  { %1227 = vmatpush1.bf16.msra.mxu1 %v1212_v56  ;;  %v1199_v59 = vpop.permute.xlu0 %1198  ;;  %1299 = vmatprep.mubr.bf16.mxu0 %v1787_v6  ;;  %v1356_v62 = vpop.permute.xlu1 %1355 }
  0xea   :  { %v1206_v60 = vsel %vm1202_vm9, %v1197_v53, %v1199_v59  ;;  %1681 = vmatprep.subr.bf16.mxu1 %v1803_v27 }
  0xeb   :  { %1613 = vmatprep.subr.msk.bf16.mxu0 %vm85_vm1, %v1206_v60 }
  0xec   :  { %1268 = vmatpush1.bf16.msra.mxu0 %v1218_v61 }
  0xed   :  { %v1201_v63 = vpop.permute.xlu0 %1200  ;;  %v1360_v2 = vpop.permute.xlu1 %1359 }
  0xee   :  { %v1207_v0 = vsel %vm1202_vm9, %v1199_v59, %v1201_v63 }
  0xef   :  { %v1224_v1 = vsel %vm85_vm1, %v1207_v0, 0  ;;  %1612 = vmatmul.mubr.msk.bf16.vlgmr.msra.gmra.mrb[40].mxu1 %vm81_vm2, %v1189_v58  ;;  %1614 = vmatmul.mubr.msk.bf16.vlgmr.msra.gmra.mrb[44].mxu0 %vm81_vm2, %v1189_v58 }
  0xf0   :  { %1682 = vmatpush3.bf16.msra.mxu1 %v1224_v1  ;;  %1683 = vmatprep.mubr.msk.bf16.mxu1 %vm1804_vm3, %v1803_v27 }
  0xf1   :  { %v1358_v3 = vpop.permute.xlu0 %1357  ;;  %1423 = vmatprep.mubr.bf16.mxu0 %v1787_v6  ;;  %v1362_v8 = vpop.permute.xlu1 %1361 }
  0xf2   :  { %v1368_v4 = vsel %vm1367_vm10, %v1356_v62, %v1358_v3  ;;  %v1369_v5 = vsel %vm1367_vm10, %v1358_v3, %v1360_v2  ;;  %v1370_v10 = vsel %vm1367_vm10, %v1360_v2, %v1362_v8 }
  0xf3   :  { %v1377_v7 = vsel %vm85_vm1, %v1368_v4, 0  ;;  %1616 = vmatprep.subr.msk.bf16.mxu0 %vm85_vm1, %v1369_v5  ;;  %v1383_v15 = vsel %vm85_vm1, %v1370_v10, 0 }
  0xf4   :  { %1392 = vmatpush1.bf16.msra.mxu0 %v1377_v7 }
  0xf5   :  { %v1354_v9 = vpop.permute.xlu0 %1353  ;;  %1687 = vmatprep.subr.bf16.mxu0 %v1803_v27  ;;  %v1366_v11 = vpop.permute.xlu1 %1365 }
  0xf7   :  { %1684 = vmatmul.mubr.msk.bf16.vlgmr.msra.gmra.mrb[44].mxu1 %vm81_vm2, %v1189_v58  ;;  %1617 = vmatmul.mubr.msk.bf16.vlgmr.msra.gmra.mrb[48].mxu0 %vm81_vm2, %v1354_v9 }
  0xf8   :  { %1464 = vmatprep.mubr.bf16.mxu1 %v1787_v6  ;;  %1689 = vmatprep.mubr.msk.bf16.mxu0 %vm1804_vm3, %v1803_v27 }
  0xf9   :  { %v1364_v12 = vpop.permute.xlu0 %1363 }
  0xfa   :  { %v1371_v13 = vsel %vm1367_vm10, %v1362_v8, %v1364_v12  ;;  %v1372_v14 = vsel %vm1367_vm10, %v1364_v12, %v1366_v11 }
  0xfb   :  { %v1389_v16 = vsel %vm85_vm1, %v1372_v14, 0  ;;  %1618 = vmatprep.subr.msk.bf16.mxu1 %vm85_vm1, %v1371_v13 }
  0xfc   :  { %1433 = vmatpush1.bf16.msra.mxu1 %v1383_v15  ;;  %1688 = vmatpush3.bf16.msra.mxu0 %v1389_v16 }
  0xff   :  { %1619 = vmatmul.mubr.msk.bf16.vlgmr.msra.gmra.mrb[48].mxu1 %vm81_vm2, %v1354_v9  ;;  %1690 = vmatmul.mubr.msk.bf16.vlgmr.msra.gmra.mrb[52].mxu0 %vm81_vm2, %v1354_v9 }
 0x16a   :  { %v135_v6 = vpop.f32.mrb[0].mxu0 }
 0x16b   :  { %v137_v27 = vpop.f32.mrb[1].mxu0 }
 0x16c   :  { %v139_v17 = vpop.f32.mrb[2].mxu0 }
 0x16d   :  { %v140_v18 = vpop.f32.mrb[3].mxu0 }
 0x172   :  { %v176_v19 = vpop.f32.mrb[0].mxu1  ;;  %v217_v20 = vpop.f32.mrb[4].mxu0 }
 0x173   :  { %v178_v21 = vpop.f32.mrb[1].mxu1  ;;  %v1643_v22 = vpop.f32.mrb[5].mxu0 }
 0x174   :  { %v180_v23 = vpop.f32.mrb[2].mxu1  ;;  %v220_v24 = vpop.f32.mrb[6].mxu0 }
 0x175   :  { %v181_v25 = vpop.f32.mrb[3].mxu1  ;;  %v1644_v26 = vpop.f32.mrb[7].mxu0 }
 0x17a   :  { %v275_v28 = vpop.f32.mrb[4].mxu1  ;;  %v316_v29 = vpop.f32.mrb[8].mxu0 }
 0x17b   :  { %v276_v30 = vadd.f32 %v275_v28, %v135_v6  ;;  %v317_v31 = vadd.f32 %v316_v29, %v176_v19  ;;  %v277_v32 = vpop.f32.mrb[5].mxu1  ;;  %v318_v33 = vpop.f32.mrb[9].mxu0 }
 0x17c   :  { %v278_v34 = vadd.f32 %v277_v32, %v137_v27  ;;  %v319_v35 = vadd.f32 %v318_v33, %v178_v21  ;;  %v279_v36 = vpop.f32.mrb[6].mxu1  ;;  %v320_v37 = vpop.f32.mrb[10].mxu0 }
 0x17d   :  { %v280_v38 = vpop.f32.mrb[7].mxu1  ;;  %v321_v39 = vpop.f32.mrb[11].mxu0 }
 0x182   :  { %v357_v40 = vpop.f32.mrb[8].mxu1  ;;  %v435_v41 = vpop.f32.mrb[12].mxu0 }
 0x183   :  { %v358_v42 = vadd.f32 %v357_v40, %v217_v20  ;;  %v523_v43 = vadd.f32 %v435_v41, %v276_v30  ;;  %v437_v44 = vpop.f32.mrb[13].mxu0  ;;  %v1649_v45 = vpop.f32.mrb[9].mxu1 }
 0x184   :  { %v524_v46 = vadd.f32 %v437_v44, %v278_v34  ;;  %v439_v47 = vpop.f32.mrb[14].mxu0  ;;  %v360_v48 = vpop.f32.mrb[10].mxu1 }
 0x185   :  { %v440_v49 = vpop.f32.mrb[15].mxu0  ;;  %v1650_v50 = vpop.f32.mrb[11].mxu1 }
 0x18a   :  { %v476_v51 = vpop.f32.mrb[12].mxu1  ;;  %v517_v52 = vpop.f32.mrb[16].mxu0 }
 0x18b   :  { %v525_v53 = vadd.f32 %v476_v51, %v317_v31  ;;  %v527_v54 = vadd.f32 %v517_v52, %v358_v42  ;;  %v478_v55 = vpop.f32.mrb[13].mxu1  ;;  %v1655_v56 = vpop.f32.mrb[17].mxu0 }
 0x18c   :  { %v526_v57 = vadd.f32 %v478_v55, %v319_v35  ;;  %v480_v58 = vpop.f32.mrb[14].mxu1  ;;  %v520_v59 = vpop.f32.mrb[18].mxu0 }
 0x18d   :  { %v481_v60 = vpop.f32.mrb[15].mxu1  ;;  %v1656_v61 = vpop.f32.mrb[19].mxu0 }
 0x192   :  { %v600_v62 = vpop.f32.mrb[16].mxu1  ;;  %v641_v63 = vpop.f32.mrb[20].mxu0 }
 0x193   :  { %v688_v0 = vadd.f32 %v600_v62, %v523_v43  ;;  %v690_v1 = vadd.f32 %v641_v63, %v525_v53  ;;  %v602_v2 = vpop.f32.mrb[17].mxu1  ;;  %v643_v3 = vpop.f32.mrb[21].mxu0 }
 0x194   :  { %v689_v4 = vadd.f32 %v602_v2, %v524_v46  ;;  %v691_v5 = vadd.f32 %v643_v3, %v526_v57  ;;  %v604_v7 = vpop.f32.mrb[18].mxu1  ;;  %v645_v8 = vpop.f32.mrb[22].mxu0 }
 0x195   :  { %v605_v9 = vpop.f32.mrb[19].mxu1  ;;  %v646_v10 = vpop.f32.mrb[23].mxu0 }
 0x19a   :  { %v682_v11 = vpop.f32.mrb[20].mxu1  ;;  %v765_v12 = vpop.f32.mrb[24].mxu0 }
 0x19b   :  { %v692_v13 = vadd.f32 %v682_v11, %v527_v54  ;;  %v853_v14 = vadd.f32 %v765_v12, %v688_v0  ;;  %v1661_v15 = vpop.f32.mrb[21].mxu1  ;;  %v767_v16 = vpop.f32.mrb[25].mxu0 }
 0x19c   :  { %v854_v6 = vadd.f32 %v767_v16, %v689_v4  ;;  %v685_v27 = vpop.f32.mrb[22].mxu1  ;;  %v769_v17 = vpop.f32.mrb[26].mxu0 }
 0x19d   :  { %v1662_v18 = vpop.f32.mrb[23].mxu1  ;;  %v770_v19 = vpop.f32.mrb[27].mxu0 }
 0x19e   :  { %v1522_v15 = vpop.permute.xlu0 %1521 }
 0x1a2   :  { %v806_v20 = vpop.f32.mrb[24].mxu1  ;;  %v847_v21 = vpop.f32.mrb[28].mxu0 }
 0x1a3   :  { %v855_v22 = vadd.f32 %v806_v20, %v690_v1  ;;  %v857_v23 = vadd.f32 %v847_v21, %v692_v13  ;;  %v808_v24 = vpop.f32.mrb[25].mxu1  ;;  %v1667_v25 = vpop.f32.mrb[29].mxu0 }
 0x1a4   :  { %v856_v26 = vadd.f32 %v808_v24, %v691_v5  ;;  %v810_v28 = vpop.f32.mrb[26].mxu1  ;;  %v850_v29 = vpop.f32.mrb[30].mxu0 }
 0x1a5   :  { %v811_v30 = vpop.f32.mrb[27].mxu1  ;;  %v1668_v31 = vpop.f32.mrb[31].mxu0 }
 0x1aa   :  { %v930_v32 = vpop.f32.mrb[28].mxu1  ;;  %v971_v33 = vpop.f32.mrb[32].mxu0 }
 0x1ab   :  { %v1018_v34 = vadd.f32 %v930_v32, %v853_v14  ;;  %v1020_v35 = vadd.f32 %v971_v33, %v855_v22  ;;  %v932_v36 = vpop.f32.mrb[29].mxu1  ;;  %v973_v37 = vpop.f32.mrb[33].mxu0 }
 0x1ac   :  { %v1019_v38 = vadd.f32 %v932_v36, %v854_v6  ;;  %v1021_v39 = vadd.f32 %v973_v37, %v856_v26  ;;  %v934_v40 = vpop.f32.mrb[30].mxu1  ;;  %v975_v41 = vpop.f32.mrb[34].mxu0 }
 0x1ad   :  { %v935_v42 = vpop.f32.mrb[31].mxu1  ;;  %v976_v43 = vpop.f32.mrb[35].mxu0 }
 0x1b2   :  { %v1012_v44 = vpop.f32.mrb[32].mxu1  ;;  %v1095_v45 = vpop.f32.mrb[36].mxu0 }
 0x1b3   :  { %v1022_v46 = vadd.f32 %v1012_v44, %v857_v23  ;;  %v1183_v47 = vadd.f32 %v1095_v45, %v1018_v34  ;;  %v1673_v48 = vpop.f32.mrb[33].mxu1  ;;  %v1097_v49 = vpop.f32.mrb[37].mxu0 }
 0x1b4   :  { %v1184_v50 = vadd.f32 %v1097_v49, %v1019_v38  ;;  %v1015_v51 = vpop.f32.mrb[34].mxu1  ;;  %v1099_v52 = vpop.f32.mrb[38].mxu0 }
 0x1b5   :  { %v1674_v53 = vpop.f32.mrb[35].mxu1  ;;  %v1100_v54 = vpop.f32.mrb[39].mxu0 }
 0x1ba   :  { %v1136_v55 = vpop.f32.mrb[36].mxu1  ;;  %v1177_v56 = vpop.f32.mrb[40].mxu0 }
 0x1bb   :  { %v1185_v57 = vadd.f32 %v1136_v55, %v1020_v35  ;;  %v1187_v58 = vadd.f32 %v1177_v56, %v1022_v46  ;;  %v1138_v59 = vpop.f32.mrb[37].mxu1  ;;  %v1679_v60 = vpop.f32.mrb[41].mxu0 }
 0x1bc   :  { %v1186_v61 = vadd.f32 %v1138_v59, %v1021_v39  ;;  %v1140_v62 = vpop.f32.mrb[38].mxu1  ;;  %v1180_v63 = vpop.f32.mrb[42].mxu0 }
 0x1bd   :  { %v1141_v0 = vpop.f32.mrb[39].mxu1  ;;  %v1680_v1 = vpop.f32.mrb[43].mxu0 }
 0x1c2   :  { %v1260_v2 = vpop.f32.mrb[40].mxu1  ;;  %v1301_v3 = vpop.f32.mrb[44].mxu0 }
 0x1c3   :  { %v1348_v4 = vadd.f32 %v1260_v2, %v1183_v47  ;;  %v1350_v5 = vadd.f32 %v1301_v3, %v1185_v57  ;;  %v1262_v7 = vpop.f32.mrb[41].mxu1  ;;  %v1303_v8 = vpop.f32.mrb[45].mxu0 }
 0x1c4   :  { %v1349_v9 = vadd.f32 %v1262_v7, %v1184_v50  ;;  %v1351_v10 = vadd.f32 %v1303_v8, %v1186_v61  ;;  %v1264_v11 = vpop.f32.mrb[42].mxu1  ;;  %v1305_v12 = vpop.f32.mrb[46].mxu0 }
 0x1c5   :  { %v1265_v13 = vpop.f32.mrb[43].mxu1  ;;  %v1306_v14 = vpop.f32.mrb[47].mxu0 }
 0x1ca   :  { %v1342_v16 = vpop.f32.mrb[44].mxu1  ;;  %v1425_v6 = vpop.f32.mrb[48].mxu0 }
 0x1cb   :  { %v1352_v27 = vadd.f32 %v1342_v16, %v1187_v58  ;;  %v1513_v17 = vadd.f32 %v1425_v6, %v1348_v4  ;;  %v1685_v18 = vpop.f32.mrb[45].mxu1  ;;  %v1427_v19 = vpop.f32.mrb[49].mxu0 }
 0x1cc   :  { %v1514_v20 = vadd.f32 %v1427_v19, %v1349_v9  ;;  %v1345_v21 = vpop.f32.mrb[46].mxu1  ;;  %v1429_v22 = vpop.f32.mrb[50].mxu0 }
 0x1cd   :  { %v1524_v23 = vadd.f32 %v1522_v15, %v1513_v17  ;;  %v1686_v24 = vpop.f32.mrb[47].mxu1  ;;  %v1430_v25 = vpop.f32.mrb[51].mxu0 }
 0x1ce   :  { %v1525_v26 = vadd.f32 %v1522_v15, %v1514_v20 }
 0x1cf   :  { %v1529_v28 = vsub.f32 0.0, %v1524_v23 }
 0x1d0   :  { %v1530_v29 = vsub.f32 0.0, %v1525_v26 }
 0x1d1   :  { %v1534_v30 = vmul.f32 1.442695, %v1529_v28 }
 0x1d2   :  { %v1536_v31 = vmul.f32 1.442695, %v1530_v29  ;;  %v1466_v32 = vpop.f32.mrb[48].mxu1  ;;  %v1507_v33 = vpop.f32.mrb[52].mxu0 }
 0x1d3   :  { %1717 = vpow2.f32 %v1534_v30  ;;  %v1515_v34 = vadd.f32 %v1466_v32, %v1350_v5  ;;  %v1517_v35 = vadd.f32 %v1507_v33, %v1352_v27  ;;  %v1468_v36 = vpop.f32.mrb[49].mxu1  ;;  %v1691_v37 = vpop.f32.mrb[53].mxu0 }
 0x1d4   :  { %1719 = vpow2.f32 %v1536_v31  ;;  %v1516_v38 = vadd.f32 %v1468_v36, %v1351_v10  ;;  %v1470_v39 = vpop.f32.mrb[50].mxu1  ;;  %v1510_v40 = vpop.f32.mrb[54].mxu0 }
 0x1d5   :  { %v1526_v41 = vadd.f32 %v1522_v15, %v1515_v34  ;;  %v1528_v42 = vadd.f32 %v1522_v15, %v1517_v35  ;;  %v1471_v43 = vpop.f32.mrb[51].mxu1  ;;  %v1692_v44 = vpop.f32.mrb[55].mxu0 }
 0x1d6   :  { %v1527_v45 = vadd.f32 %v1522_v15, %v1516_v38 }
 0x1d7   :  { %v1531_v46 = vsub.f32 0.0, %v1526_v41  ;;  %v1533_v47 = vsub.f32 0.0, %v1528_v42 }
 0x1d8   :  { %v1532_v48 = vsub.f32 0.0, %v1527_v45 }
 0x1d9   :  { %v1538_v49 = vmul.f32 1.442695, %v1531_v46  ;;  %v1542_v50 = vmul.f32 1.442695, %v1533_v47 }
 0x1da   :  { %v1540_v51 = vmul.f32 1.442695, %v1532_v48 }
 0x1db   :  { %1721 = vpow2.f32 %v1538_v49 }
 0x1dc   :  { %1723 = vpow2.f32 %v1542_v50 }
 0x1dd   :  { %v1718_v52 = vpop.eup %1717  ;;  %1725 = vpow2.f32 %v1540_v51 }
 0x1de   :  { %v1720_v53 = vpop.eup %1719  ;;  %v1544_v54 = vadd.f32 1.0, %v1718_v52 }
 0x1df   :  { %v1545_v55 = vadd.f32 1.0, %v1720_v53 }
 0x1e0   :  { %1727 = vrcp.f32 %v1544_v54 }
 0x1e1   :  { %1729 = vrcp.f32 %v1545_v55 }
 0x1e5   :  { %v1722_v56 = vpop.eup %1721 }
 0x1e6   :  { %v1724_v57 = vpop.eup %1723  ;;  %v1546_v58 = vadd.f32 1.0, %v1722_v56 }
 0x1e7   :  { %v1726_v59 = vpop.eup %1725  ;;  %v1548_v60 = vadd.f32 1.0, %v1724_v57 }
 0x1e8   :  { %1731 = vrcp.f32 %v1546_v58  ;;  %v1547_v61 = vadd.f32 1.0, %v1726_v59 }
 0x1e9   :  { %1733 = vrcp.f32 %v1548_v60 }
 0x1ea   :  { %v1728_v62 = vpop.eup %1727  ;;  %1735 = vrcp.f32 %v1547_v61 }
 0x1eb   :  { %v1730_v63 = vpop.eup %1729  ;;  %1554 = vst [vmem:[#allocation5] sm:$0xff] %v1728_v62 }
 0x1ec   :  { %1555 = vst [vmem:[#allocation5 + $0x8] sm:$0xff] %v1730_v63 }
 0x1f2   :  { %v1732_v0 = vpop.eup %1731 }
 0x1f3   :  { %v1734_v1 = vpop.eup %1733  ;;  %1556 = vst [vmem:[#allocation5 + $0x10] sm:$0xff] %v1732_v0 }
 0x1f4   :  { %v1736_v2 = vpop.eup %1735  ;;  %1558 = vst [vmem:[#allocation5 + $0x20] sm:$0xff] %v1734_v1 }
 0x1f5   :  { %1557 = vst [vmem:[#allocation5 + $0x18] sm:$0xff] %v1736_v2 }
 0x1f6   :  { %1770 = shalt.err (!%p1767_p12)
}
 0x1f7   :  { %s1771_s18 = scalar_lea.hbm %s2105_s3, 640 }
 0x1f8   :  { %p1772_p13 = scmp.ne.s32.totalorder %s2105_s3, %s1771_s18  ;;  %p1775_p0 = scmp.lt.u32.totalorder %s1771_s18, %s2105_s3 }
 0x1fa   :  { %p1777_p1 = pnand %p1775_p0, %p1772_p13 }
 0x1fc   :  { %1780 = shalt.err (!%p1777_p1)
}
 0x1fd   :  { %1568 = dma.vmem_to_hbm [thread:$0]  %s1566_s14, 640, %s2105_s3, [#allocation4]  }
 0x1fe   :  { %1783 = dma.done.wait [#allocation4], 640  }
 0x1ff   :  { %1784 = vsyncadd [#allocation4], 4294966656 }
 0x200   :  { %1572 = vsyncpa [#allocation3], 1 }
 0x201   :  { %1573 = vsyncpa [#allocation4], 1 }

</bundles_post_ra>
